<compile_context>
chip_gen: v6e
topology: v6e:2x2x1
jax: 0.10.0
libtpu: 0.0.40
codegen_flags: <defaults>
</compile_context>

<pallas_src>
import functools

import jax
import jax.numpy as jnp
from jax.experimental import pallas as pl
from jax.experimental.pallas import tpu as pltpu

_VMEM_LIMIT = 48 * 1024 * 1024  # above the 32 MiB scoped default, safe on v7x


def _round_up(x, m):
    return (x + m - 1) // m * m


# ----------------------------------------------------------------------------
# Kernel 1: tiled matmul + folded-BN bias (+ optional residual) + optional ReLU
#   out = maybe_relu(x @ w_scaled + bias (+ residual))
# Grid = (M/tm, N/tn, K/tk); K axis last & "arbitrary"; f32 VMEM accumulator.
# ----------------------------------------------------------------------------
def _matmul_bn_kernel(x_ref, w_ref, b_ref, o_ref, acc_ref, *, apply_relu):
    @pl.when(pl.program_id(2) == 0)
    def _():
        acc_ref[...] = jnp.zeros_like(acc_ref)

    acc_ref[...] += jnp.dot(x_ref[...], w_ref[...],
                            preferred_element_type=jnp.float32)

    @pl.when(pl.program_id(2) == pl.num_programs(2) - 1)
    def _():
        out = acc_ref[...] + b_ref[...]
        if apply_relu:
            out = jnp.maximum(out, 0.0)
        o_ref[...] = out.astype(o_ref.dtype)


def _matmul_bn_res_kernel(x_ref, w_ref, b_ref, res_ref, o_ref, acc_ref, *,
                          apply_relu):
    @pl.when(pl.program_id(2) == 0)
    def _():
        acc_ref[...] = jnp.zeros_like(acc_ref)

    acc_ref[...] += jnp.dot(x_ref[...], w_ref[...],
                            preferred_element_type=jnp.float32)

    @pl.when(pl.program_id(2) == pl.num_programs(2) - 1)
    def _():
        out = acc_ref[...] + b_ref[...] + res_ref[...].astype(jnp.float32)
        if apply_relu:
            out = jnp.maximum(out, 0.0)
        o_ref[...] = out.astype(o_ref.dtype)


def fused_matmul_bn(x2d, w2d, scale, bias, residual=None, apply_relu=True,
                    out_dtype=jnp.bfloat16):
    """maybe_relu((x2d @ (w2d * scale)) + bias [+ residual]) via Pallas."""
    m, k = x2d.shape
    k2, cout = w2d.shape
    assert k == k2

    # Fold BN scale into the weight (epilogue becomes add-only).
    w_f = w2d.astype(jnp.float32) * scale.astype(jnp.float32)[None, :]

    # --- tiling / padding (lane-dense output, rows padded to tile) ---
    cout_pad = _round_up(cout, 128)
    tn = 256 if cout_pad % 256 == 0 else 128
    m8 = _round_up(m, 8)
    if m8 >= 512:
        tm = 512
    elif m8 >= 256:
        tm = 256
    else:
        tm = m8
    m_pad = _round_up(m, tm)
    if k > 1024:                       # tile K only when it is actually large
        tk = 512
        k_pad = _round_up(k, tk)
    else:
        tk = k
        k_pad = k
    grid = (m_pad // tm, cout_pad // tn, k_pad // tk)

    xb = x2d.astype(jnp.bfloat16)
    if (m_pad, k_pad) != (m, k):
        xb = jnp.pad(xb, ((0, m_pad - m), (0, k_pad - k)))
    wb = w_f.astype(jnp.bfloat16)
    if (k_pad, cout_pad) != (k, cout):
        wb = jnp.pad(wb, ((0, k_pad - k), (0, cout_pad - cout)))
    b2 = jnp.pad(bias.astype(jnp.float32), (0, cout_pad - cout)).reshape(
        1, cout_pad)

    x_spec = pl.BlockSpec((tm, tk), lambda i, j, kk: (i, kk))
    w_spec = pl.BlockSpec((tk, tn), lambda i, j, kk: (kk, j))
    b_spec = pl.BlockSpec((1, tn), lambda i, j, kk: (0, j))
    o_spec = pl.BlockSpec((tm, tn), lambda i, j, kk: (i, j))

    cost = pl.CostEstimate(
        flops=2 * m_pad * k_pad * cout_pad,
        transcendentals=0,
        bytes_accessed=2 * (m_pad * k_pad + k_pad * cout_pad)
        + m_pad * cout_pad * jnp.dtype(out_dtype).itemsize)
    cparams = pltpu.CompilerParams(
        dimension_semantics=("parallel", "parallel", "arbitrary"),
        vmem_limit_bytes=_VMEM_LIMIT)
    scratch = [pltpu.VMEM((tm, tn), jnp.float32)]
    out_shape = jax.ShapeDtypeStruct((m_pad, cout_pad), out_dtype)

    if residual is None:
        kernel = functools.partial(_matmul_bn_kernel, apply_relu=apply_relu)
        out = pl.pallas_call(
            kernel,
            out_shape=out_shape,
            grid_spec=pltpu.PrefetchScalarGridSpec(
                num_scalar_prefetch=0, grid=grid,
                in_specs=[x_spec, w_spec, b_spec],
                out_specs=o_spec, scratch_shapes=scratch),
            compiler_params=cparams,
            cost_estimate=cost,
        )(xb, wb, b2)
    else:
        rb = residual  # keep the residual stream in its native (f32) dtype
        if rb.shape != (m_pad, cout_pad):
            rb = jnp.pad(rb, ((0, m_pad - m), (0, cout_pad - cout)))
        r_spec = pl.BlockSpec((tm, tn), lambda i, j, kk: (i, j))
        kernel = functools.partial(_matmul_bn_res_kernel, apply_relu=apply_relu)
        out = pl.pallas_call(
            kernel,
            out_shape=out_shape,
            grid_spec=pltpu.PrefetchScalarGridSpec(
                num_scalar_prefetch=0, grid=grid,
                in_specs=[x_spec, w_spec, b_spec, r_spec],
                out_specs=o_spec, scratch_shapes=scratch),
            compiler_params=cparams,
            cost_estimate=cost,
        )(xb, wb, b2, rb)

    if (m_pad, cout_pad) != (m, cout):
        out = out[:m, :cout]
    return out


# ----------------------------------------------------------------------------
# Kernel 2: 3x3 conv (pad=1, stride s) + folded-BN bias + ReLU.
# The padded input is phase-split by `stride` at the JAX level
# (xph[n, pr, pc, i, j, c] = xpad[n, i*s + pr, j*s + pc, c]) so every tap is a
# contiguous, statically-offset window inside the kernel — no im2col in HBM.
# TODO(synk): for very large spatial extents, tile the output rows (with a
# one-row halo) instead of processing one whole image per grid step.
# ----------------------------------------------------------------------------
def _conv3x3_bn_kernel(x_ref, w_ref, b_ref, o_ref, *, stride, ho, wo):
    c = x_ref.shape[-1]
    acc = None
    for t in range(9):
        dy, dx = t // 3, t % 3
        pr, oy = dy % stride, dy // stride
        pc, ox = dx % stride, dx // stride
        xt = x_ref[0, pr, pc, oy:oy + ho, ox:ox + wo, :].reshape(ho * wo, c)
        part = jnp.dot(xt, w_ref[t], preferred_element_type=jnp.float32)
        acc = part if acc is None else acc + part
    out = jnp.maximum(acc + b_ref[...], 0.0)
    o_ref[0] = out.astype(o_ref.dtype)


def conv3x3_bn_relu(x_nhwc, w_oihw, scale, bias, stride,
                    out_dtype=jnp.bfloat16):
    n, h, w, c = x_nhwc.shape
    cout = w_oihw.shape[0]
    ho = (h + 2 - 3) // stride + 1
    wo = (w + 2 - 3) // stride + 1

    # pad=1 spatially, plus bottom/right zeros so dims are multiples of stride.
    rows_tot = _round_up(h + 2, stride)
    cols_tot = _round_up(w + 2, stride)
    xp = jnp.pad(x_nhwc.astype(jnp.bfloat16),
                 ((0, 0), (1, rows_tot - h - 1), (1, cols_tot - w - 1), (0, 0)))
    hq, wq = rows_tot // stride, cols_tot // stride
    xph = xp.reshape(n, hq, stride, wq, stride, c).transpose(0, 2, 4, 1, 3, 5)
    # xph: (n, stride, stride, hq, wq, c)

    # Weight: (cout, c, 3, 3) -> (9, c, cout_pad) with BN scale folded in.
    wt = jnp.transpose(w_oihw.astype(jnp.float32), (2, 3, 1, 0)).reshape(
        9, c, cout)
    wt = wt * scale.astype(jnp.float32).reshape(1, 1, cout)
    cout_pad = _round_up(cout, 128)
    wt = jnp.pad(wt, ((0, 0), (0, 0), (0, cout_pad - cout))).astype(
        jnp.bfloat16)
    b2 = jnp.pad(bias.astype(jnp.float32), (0, cout_pad - cout)).reshape(
        1, cout_pad)

    tn = 256 if cout_pad % 256 == 0 else 128
    grid = (n, cout_pad // tn)

    kernel = functools.partial(_conv3x3_bn_kernel, stride=stride, ho=ho, wo=wo)
    out = pl.pallas_call(
        kernel,
        out_shape=jax.ShapeDtypeStruct((n, ho * wo, cout_pad), out_dtype),
        grid_spec=pltpu.PrefetchScalarGridSpec(
            num_scalar_prefetch=0, grid=grid,
            in_specs=[
                pl.BlockSpec((1, stride, stride, hq, wq, c),
                             lambda b, j: (b, 0, 0, 0, 0, 0)),
                pl.BlockSpec((9, c, tn), lambda b, j: (0, 0, j)),
                pl.BlockSpec((1, tn), lambda b, j: (0, j)),
            ],
            out_specs=pl.BlockSpec((1, ho * wo, tn), lambda b, j: (b, 0, j))),
        compiler_params=pltpu.CompilerParams(
            dimension_semantics=("parallel", "parallel"),
            vmem_limit_bytes=_VMEM_LIMIT),
        cost_estimate=pl.CostEstimate(
            flops=2 * n * ho * wo * 9 * c * cout_pad,
            transcendentals=0,
            bytes_accessed=2 * (n * rows_tot * cols_tot * c
                                + 9 * c * cout_pad + n * ho * wo * cout_pad)),
    )(xph, wt, b2)

    return out[:, :, :cout].reshape(n, ho, wo, cout)


# ----------------------------------------------------------------------------
# Glue (plain JAX): BN folding
# ----------------------------------------------------------------------------
def fold_bn(bn, eps=1e-5):
    gamma, beta, mean, var = bn
    scale = gamma / jnp.sqrt(var + eps)
    bias = beta - mean * scale
    return scale, bias


# ----------------------------------------------------------------------------
# Bottleneck forward (Pallas-backed).  jit with static stride so all the
# layout glue (transposes / pads / strided shortcut slice) fuses in XLA and
# the three pallas_call dispatches run back-to-back without retracing.
# ----------------------------------------------------------------------------
@functools.partial(jax.jit, static_argnums=(2,))
def bottleneck_forward(x_nchw, params, stride):
    n, cin, h, w = x_nchw.shape
    planes = params["w1"].shape[0]
    cout = 4 * planes

    # TODO(synk): across a full ResNet, keep activations NHWC between blocks to
    # avoid these per-block transposes.
    x = jnp.transpose(x_nchw, (0, 2, 3, 1))            # NHWC, f32
    x_bf = x.astype(jnp.bfloat16)

    # conv1 (1x1) + bn1 + relu
    w1 = params["w1"].reshape(planes, cin).T           # (cin, planes)
    s1, b1 = fold_bn(params["bn1"])
    h1 = fused_matmul_bn(x_bf.reshape(n * h * w, cin), w1, s1, b1,
                         apply_relu=True, out_dtype=jnp.bfloat16)
    h1 = h1.reshape(n, h, w, planes)

    # conv2 (3x3, stride, pad=1) + bn2 + relu — in-kernel tap accumulation
    s2, b2 = fold_bn(params["bn2"])
    h2 = conv3x3_bn_relu(h1, params["w2"], s2, b2, stride,
                         out_dtype=jnp.bfloat16)        # (n, ho, wo, planes)
    _, ho, wo, _ = h2.shape
    h2_2d = h2.reshape(n * ho * wo, planes)

    # shortcut branch (kept f32 so the residual add happens at full precision)
    if "wsc" in params:  # projection: 1x1 conv (stride) + bn, no relu
        # TODO(synk): the strided spatial subsample is done in XLA; it could be
        # folded into the shortcut matmul's input BlockSpec.
        xs = x_bf[:, ::stride, ::stride, :][:, :ho, :wo, :].reshape(
            n * ho * wo, cin)
        wsc = params["wsc"].reshape(cout, cin).T
        ssc, bsc = fold_bn(params["bnsc"])
        sc = fused_matmul_bn(xs, wsc, ssc, bsc, apply_relu=False,
                             out_dtype=jnp.float32)
    else:                # identity (stride == 1, cin == cout guaranteed)
        sc = x.reshape(n * ho * wo, cout)

    # conv3 (1x1) + bn3 + residual add + relu (fused in one kernel call)
    w3 = params["w3"].reshape(cout, planes).T
    s3, b3 = fold_bn(params["bn3"])
    out = fused_matmul_bn(h2_2d, w3, s3, b3, residual=sc, apply_relu=True,
                          out_dtype=jnp.float32)
    out = out.reshape(n, ho, wo, cout)
    return jnp.transpose(out, (0, 3, 1, 2))             # back to NCHW


# ----------------------------------------------------------------------------
# Pure-JAX f32 reference (mirrors the PyTorch module in eval mode)
# ----------------------------------------------------------------------------
def _conv(x, w, stride=1, padding=0):
    return jax.lax.conv_general_dilated(
        x, w, window_strides=(stride, stride),
        padding=((padding, padding), (padding, padding)),
        dimension_numbers=("NCHW", "OIHW", "NCHW"),
        precision=jax.lax.Precision.HIGHEST)


def _bn(x, bn, eps=1e-5):
    gamma, beta, mean, var = bn
    inv = gamma / jnp.sqrt(var + eps)
    return x * inv[None, :, None, None] + (beta - mean * inv)[None, :, None, None]


def bottleneck_reference(x, params, stride):
    out = jax.nn.relu(_bn(_conv(x, params["w1"]), params["bn1"]))
    out = jax.nn.relu(_bn(_conv(out, params["w2"], stride=stride, padding=1),
                          params["bn2"]))
    out = _bn(_conv(out, params["w3"]), params["bn3"])
    if "wsc" in params:
        sc = _bn(_conv(x, params["wsc"], stride=stride), params["bnsc"])
    else:
        sc = x
    return jax.nn.relu(out + sc)


# ----------------------------------------------------------------------------
# Deterministic parameter init
# ----------------------------------------------------------------------------
def init_params(key, inplanes, planes, stride):
    cout = 4 * planes
    keys = jax.random.split(key, 20)
    ki = iter(keys)

    def wgt(shape):
        return 0.1 * jax.random.normal(next(ki), shape, jnp.float32)

    def bn(c):
        gamma = 1.0 + 0.1 * jax.random.normal(next(ki), (c,), jnp.float32)
        beta = 0.1 * jax.random.normal(next(ki), (c,), jnp.float32)
        mean = 0.1 * jax.random.normal(next(ki), (c,), jnp.float32)
        var = jnp.abs(jax.random.normal(next(ki), (c,), jnp.float32)) + 0.5
        return (gamma, beta, mean, var)

    params = {
        "w1": wgt((planes, inplanes, 1, 1)), "bn1": bn(planes),
        "w2": wgt((planes, planes, 3, 3)), "bn2": bn(planes),
        "w3": wgt((cout, planes, 1, 1)), "bn3": bn(cout),
    }
    if stride != 1 or inplanes != cout:
        params["wsc"] = wgt((cout, inplanes, 1, 1))
        params["bnsc"] = bn(cout)
    return params


if __name__ == "__main__":
    key = jax.random.PRNGKey(0)

    configs = [
        # (batch, inplanes, planes, spatial, stride)
        (2, 8, 4, 8, 2),    # projection shortcut + strided 3x3
        (2, 16, 4, 8, 1),   # identity shortcut + stride-1 3x3
    ]
    for idx, (batch, inplanes, planes, spatial, stride) in enumerate(configs):
        k_x, k_p = jax.random.split(jax.random.fold_in(key, idx))
        x = jax.random.normal(k_x, (batch, inplanes, spatial, spatial),
                              jnp.float32)
        params = init_params(k_p, inplanes, planes, stride)

        out = jax.block_until_ready(bottleneck_forward(x, params, stride))
        ref = jax.block_until_ready(bottleneck_reference(x, params, stride))

        assert out.shape == ref.shape, (out.shape, ref.shape)
        max_err = float(jnp.max(jnp.abs(out - ref)))
        # bf16 MXU operands + bf16 intermediates -> loosened tolerance vs the
        # full-f32 reference.
        assert jnp.allclose(out, ref, rtol=3e-2, atol=3e-2), (
            f"config {idx}: max abs err {max_err}")

    print("KERNEL_OK")
</pallas_src>

<mosaic_0001>
module attributes {stable_mosaic.version = 11 : i64} {
  func.func @_matmul_bn_kernel(%arg0: i32, %arg1: i32, %arg2: i32, %arg3: memref<128x8xbf16, #tpu.memory_space<vmem>>, %arg4: memref<8x128xbf16, #tpu.memory_space<vmem>>, %arg5: memref<1x128xf32, #tpu.memory_space<vmem>>, %arg6: memref<128x128xbf16, #tpu.memory_space<vmem>>, %arg7: memref<128x128xf32, #tpu.memory_space<vmem>>) attributes {dimension_semantics = [#tpu.dimension_semantics<parallel>, #tpu.dimension_semantics<parallel>, #tpu.dimension_semantics<arbitrary>], iteration_bounds = array<i64: 1, 1, 1>, scalar_prefetch = 0 : i64, scratch_operands = 1 : i64, tpu.core_type = #tpu.core_type<tc>, window_params = [{transform_indices = @transform_0, window_bounds = array<i64: 128, 8>}, {transform_indices = @transform_1, window_bounds = array<i64: 8, 128>}, {transform_indices = @transform_2, window_bounds = array<i64: 1, 128>}, {transform_indices = @transform_3, window_bounds = array<i64: 128, 128>}]} {
    %c0_i32 = arith.constant 0 : i32
    %0 = arith.cmpi eq, %arg2, %c0_i32 : i32
    %1 = arith.extui %0 : i1 to i32
    %c0_i32_0 = arith.constant 0 : i32
    %2 = arith.cmpi ne, %1, %c0_i32_0 : i32
    scf.if %2 {
      %cst_10 = arith.constant 0.000000e+00 : f32
      %12 = vector.broadcast %cst_10 : f32 to vector<128x128xf32>
      %c0_11 = arith.constant 0 : index
      %c0_12 = arith.constant 0 : index
      %13 = vector.load %arg7[%c0_11, %c0_12] : memref<128x128xf32, #tpu.memory_space<vmem>>, vector<128x128xf32>
      tpu.vector_store %arg7[%c0_11, %c0_12], %12 {strides = array<i32>} : memref<128x128xf32, #tpu.memory_space<vmem>>, vector<128x128xf32>,
    } else {
    }
    %c0 = arith.constant 0 : index
    %c0_1 = arith.constant 0 : index
    %3 = vector.load %arg7[%c0, %c0_1] : memref<128x128xf32, #tpu.memory_space<vmem>>, vector<128x128xf32>
    %c0_2 = arith.constant 0 : index
    %c0_3 = arith.constant 0 : index
    %4 = vector.load %arg3[%c0_2, %c0_3] : memref<128x8xbf16, #tpu.memory_space<vmem>>, vector<128x8xbf16>
    %c0_4 = arith.constant 0 : index
    %c0_5 = arith.constant 0 : index
    %5 = vector.load %arg4[%c0_4, %c0_5] : memref<8x128xbf16, #tpu.memory_space<vmem>>, vector<8x128xbf16>
    %cst = arith.constant dense<0.000000e+00> : vector<128x128xf32>
    %6 = tpu.matmul %4, %5, %cst {dimension_numbers = #tpu.dot_dimension_numbers<[1], [0], [0], [1], [0, 0, 1, 1], [], []>} : vector<128x8xbf16>, vector<8x128xbf16>, vector<128x128xf32> -> vector<128x128xf32>
    %7 = arith.addf %3, %6 : vector<128x128xf32>
    %c0_6 = arith.constant 0 : index
    %c0_7 = arith.constant 0 : index
    %8 = vector.load %arg7[%c0_6, %c0_7] : memref<128x128xf32, #tpu.memory_space<vmem>>, vector<128x128xf32>
    tpu.vector_store %arg7[%c0_6, %c0_7], %7 {strides = array<i32>} : memref<128x128xf32, #tpu.memory_space<vmem>>, vector<128x128xf32>,
    %c0_i32_8 = arith.constant 0 : i32
    %9 = arith.cmpi eq, %arg2, %c0_i32_8 : i32
    %10 = arith.extui %9 : i1 to i32
    %c0_i32_9 = arith.constant 0 : i32
    %11 = arith.cmpi ne, %10, %c0_i32_9 : i32
    scf.if %11 {
      %c0_10 = arith.constant 0 : index
      %c0_11 = arith.constant 0 : index
      %12 = vector.load %arg7[%c0_10, %c0_11] : memref<128x128xf32, #tpu.memory_space<vmem>>, vector<128x128xf32>
      %c0_12 = arith.constant 0 : index
      %c0_13 = arith.constant 0 : index
      %13 = vector.load %arg5[%c0_12, %c0_13] : memref<1x128xf32, #tpu.memory_space<vmem>>, vector<1x128xf32>
      %14 = vector.broadcast %13 : vector<1x128xf32> to vector<128x128xf32>
      %15 = arith.addf %12, %14 : vector<128x128xf32>
      %cst_14 = arith.constant 0.000000e+00 : f32
      %16 = vector.broadcast %cst_14 : f32 to vector<128x128xf32>
      %17 = arith.maximumf %15, %16 : vector<128x128xf32>
      %18 = arith.truncf %17 : vector<128x128xf32> to vector<128x128xbf16>
      %c0_15 = arith.constant 0 : index
      %c0_16 = arith.constant 0 : index
      %19 = vector.load %arg6[%c0_15, %c0_16] : memref<128x128xbf16, #tpu.memory_space<vmem>>, vector<128x128xbf16>
      tpu.vector_store %arg6[%c0_15, %c0_16], %18 {strides = array<i32>} : memref<128x128xbf16, #tpu.memory_space<vmem>>, vector<128x128xbf16>,
    } else {
    }
    return
  }
  func.func @transform_0(%arg0: i32, %arg1: i32, %arg2: i32) -> (i32, i32) {
    %c0_i32 = arith.constant 0 : i32
    return %arg0, %arg2 : i32, i32
  }
  func.func @transform_1(%arg0: i32, %arg1: i32, %arg2: i32) -> (i32, i32) {
    %c0_i32 = arith.constant 0 : i32
    return %arg2, %arg1 : i32, i32
  }
  func.func @transform_2(%arg0: i32, %arg1: i32, %arg2: i32) -> (i32, i32) {
    %c0_i32 = arith.constant 0 : i32
    %c0_i32_0 = arith.constant 0 : i32
    return %c0_i32, %arg1 : i32, i32
  }
  func.func @transform_3(%arg0: i32, %arg1: i32, %arg2: i32) -> (i32, i32) {
    %c0_i32 = arith.constant 0 : i32
    return %arg0, %arg1 : i32, i32
  }
}

module attributes {stable_mosaic.version = 11 : i64} {
  func.func @_conv3x3_bn_kernel(%arg0: i32, %arg1: i32, %arg2: memref<1x2x2x5x5x4xbf16, #tpu.memory_space<vmem>>, %arg3: memref<9x4x128xbf16, #tpu.memory_space<vmem>>, %arg4: memref<1x128xf32, #tpu.memory_space<vmem>>, %arg5: memref<1x16x128xbf16, #tpu.memory_space<vmem>>) attributes {dimension_semantics = [#tpu.dimension_semantics<parallel>, #tpu.dimension_semantics<parallel>], iteration_bounds = array<i64: 2, 1>, scalar_prefetch = 0 : i64, scratch_operands = 0 : i64, tpu.core_type = #tpu.core_type<tc>, window_params = [{transform_indices = @transform_0, window_bounds = array<i64: 1, 2, 2, 5, 5, 4>}, {transform_indices = @transform_1, window_bounds = array<i64: 9, 4, 128>}, {transform_indices = @transform_2, window_bounds = array<i64: 1, 128>}, {transform_indices = @transform_3, window_bounds = array<i64: 1, 16, 128>}]} {
    %c0 = arith.constant 0 : index
    %c0_0 = arith.constant 0 : index
    %c0_1 = arith.constant 0 : index
    %c0_2 = arith.constant 0 : index
    %c0_3 = arith.constant 0 : index
    %c0_4 = arith.constant 0 : index
    %0 = vector.load %arg2[%c0, %c0_0, %c0_1, %c0_2, %c0_3, %c0_4] : memref<1x2x2x5x5x4xbf16, #tpu.memory_space<vmem>>, vector<1x1x1x4x4x4xbf16>
    %1 = vector.shape_cast %0 : vector<1x1x1x4x4x4xbf16> to vector<4x4x4xbf16>
    %2 = vector.shape_cast %1 : vector<4x4x4xbf16> to vector<16x4xbf16>
    %c0_5 = arith.constant 0 : index
    %c0_6 = arith.constant 0 : index
    %c0_7 = arith.constant 0 : index
    %3 = vector.load %arg3[%c0_5, %c0_6, %c0_7] : memref<9x4x128xbf16, #tpu.memory_space<vmem>>, vector<1x4x128xbf16>
    %4 = vector.shape_cast %3 : vector<1x4x128xbf16> to vector<4x128xbf16>
    %cst = arith.constant dense<0.000000e+00> : vector<16x128xf32>
    %5 = tpu.matmul %2, %4, %cst {dimension_numbers = #tpu.dot_dimension_numbers<[1], [0], [0], [1], [0, 0, 1, 1], [], []>} : vector<16x4xbf16>, vector<4x128xbf16>, vector<16x128xf32> -> vector<16x128xf32>
    %c0_8 = arith.constant 0 : index
    %c0_9 = arith.constant 0 : index
    %c1 = arith.constant 1 : index
    %c0_10 = arith.constant 0 : index
    %c0_11 = arith.constant 0 : index
    %c0_12 = arith.constant 0 : index
    %6 = vector.load %arg2[%c0_8, %c0_9, %c1, %c0_10, %c0_11, %c0_12] : memref<1x2x2x5x5x4xbf16, #tpu.memory_space<vmem>>, vector<1x1x1x4x4x4xbf16>
    %7 = vector.shape_cast %6 : vector<1x1x1x4x4x4xbf16> to vector<4x4x4xbf16>
    %8 = vector.shape_cast %7 : vector<4x4x4xbf16> to vector<16x4xbf16>
    %c1_13 = arith.constant 1 : index
    %c0_14 = arith.constant 0 : index
    %c0_15 = arith.constant 0 : index
    %9 = vector.load %arg3[%c1_13, %c0_14, %c0_15] : memref<9x4x128xbf16, #tpu.memory_space<vmem>>, vector<1x4x128xbf16>
    %10 = vector.shape_cast %9 : vector<1x4x128xbf16> to vector<4x128xbf16>
    %cst_16 = arith.constant dense<0.000000e+00> : vector<16x128xf32>
    %11 = tpu.matmul %8, %10, %cst_16 {dimension_numbers = #tpu.dot_dimension_numbers<[1], [0], [0], [1], [0, 0, 1, 1], [], []>} : vector<16x4xbf16>, vector<4x128xbf16>, vector<16x128xf32> -> vector<16x128xf32>
    %12 = arith.addf %5, %11 : vector<16x128xf32>
    %c0_17 = arith.constant 0 : index
    %c0_18 = arith.constant 0 : index
    %c0_19 = arith.constant 0 : index
    %c0_20 = arith.constant 0 : index
    %c1_21 = arith.constant 1 : index
    %c0_22 = arith.constant 0 : index
    %13 = vector.load %arg2[%c0_17, %c0_18, %c0_19, %c0_20, %c1_21, %c0_22] : memref<1x2x2x5x5x4xbf16, #tpu.memory_space<vmem>>, vector<1x1x1x4x4x4xbf16>
    %14 = vector.shape_cast %13 : vector<1x1x1x4x4x4xbf16> to vector<4x4x4xbf16>
    %15 = vector.shape_cast %14 : vector<4x4x4xbf16> to vector<16x4xbf16>
    %c2 = arith.constant 2 : index
    %c0_23 = arith.constant 0 : index
    %c0_24 = arith.constant 0 : index
    %16 = vector.load %arg3[%c2, %c0_23, %c0_24] : memref<9x4x128xbf16, #tpu.memory_space<vmem>>, vector<1x4x128xbf16>
    %17 = vector.shape_cast %16 : vector<1x4x128xbf16> to vector<4x128xbf16>
    %cst_25 = arith.constant dense<0.000000e+00> : vector<16x128xf32>
    %18 = tpu.matmul %15, %17, %cst_25 {dimension_numbers = #tpu.dot_dimension_numbers<[1], [0], [0], [1], [0, 0, 1, 1], [], []>} : vector<16x4xbf16>, vector<4x128xbf16>, vector<16x128xf32> -> vector<16x128xf32>
    %19 = arith.addf %12, %18 : vector<16x128xf32>
    %c0_26 = arith.constant 0 : index
    %c1_27 = arith.constant 1 : index
    %c0_28 = arith.constant 0 : index
    %c0_29 = arith.constant 0 : index
    %c0_30 = arith.constant 0 : index
    %c0_31 = arith.constant 0 : index
    %20 = vector.load %arg2[%c0_26, %c1_27, %c0_28, %c0_29, %c0_30, %c0_31] : memref<1x2x2x5x5x4xbf16, #tpu.memory_space<vmem>>, vector<1x1x1x4x4x4xbf16>
    %21 = vector.shape_cast %20 : vector<1x1x1x4x4x4xbf16> to vector<4x4x4xbf16>
    %22 = vector.shape_cast %21 : vector<4x4x4xbf16> to vector<16x4xbf16>
    %c3 = arith.constant 3 : index
    %c0_32 = arith.constant 0 : index
    %c0_33 = arith.constant 0 : index
    %23 = vector.load %arg3[%c3, %c0_32, %c0_33] : memref<9x4x128xbf16, #tpu.memory_space<vmem>>, vector<1x4x128xbf16>
    %24 = vector.shape_cast %23 : vector<1x4x128xbf16> to vector<4x128xbf16>
    %cst_34 = arith.constant dense<0.000000e+00> : vector<16x128xf32>
    %25 = tpu.matmul %22, %24, %cst_34 {dimension_numbers = #tpu.dot_dimension_numbers<[1], [0], [0], [1], [0, 0, 1, 1], [], []>} : vector<16x4xbf16>, vector<4x128xbf16>, vector<16x128xf32> -> vector<16x128xf32>
    %26 = arith.addf %19, %25 : vector<16x128xf32>
    %c0_35 = arith.constant 0 : index
    %c1_36 = arith.constant 1 : index
    %c1_37 = arith.constant 1 : index
    %c0_38 = arith.constant 0 : index
    %c0_39 = arith.constant 0 : index
    %c0_40 = arith.constant 0 : index
    %27 = vector.load %arg2[%c0_35, %c1_36, %c1_37, %c0_38, %c0_39, %c0_40] : memref<1x2x2x5x5x4xbf16, #tpu.memory_space<vmem>>, vector<1x1x1x4x4x4xbf16>
    %28 = vector.shape_cast %27 : vector<1x1x1x4x4x4xbf16> to vector<4x4x4xbf16>
    %29 = vector.shape_cast %28 : vector<4x4x4xbf16> to vector<16x4xbf16>
    %c4 = arith.constant 4 : index
    %c0_41 = arith.constant 0 : index
    %c0_42 = arith.constant 0 : index
    %30 = vector.load %arg3[%c4, %c0_41, %c0_42] : memref<9x4x128xbf16, #tpu.memory_space<vmem>>, vector<1x4x128xbf16>
    %31 = vector.shape_cast %30 : vector<1x4x128xbf16> to vector<4x128xbf16>
    %cst_43 = arith.constant dense<0.000000e+00> : vector<16x128xf32>
    %32 = tpu.matmul %29, %31, %cst_43 {dimension_numbers = #tpu.dot_dimension_numbers<[1], [0], [0], [1], [0, 0, 1, 1], [], []>} : vector<16x4xbf16>, vector<4x128xbf16>, vector<16x128xf32> -> vector<16x128xf32>
    %33 = arith.addf %26, %32 : vector<16x128xf32>
    %c0_44 = arith.constant 0 : index
    %c1_45 = arith.constant 1 : index
    %c0_46 = arith.constant 0 : index
    %c0_47 = arith.constant 0 : index
    %c1_48 = arith.constant 1 : index
    %c0_49 = arith.constant 0 : index
    %34 = vector.load %arg2[%c0_44, %c1_45, %c0_46, %c0_47, %c1_48, %c0_49] : memref<1x2x2x5x5x4xbf16, #tpu.memory_space<vmem>>, vector<1x1x1x4x4x4xbf16>
    %35 = vector.shape_cast %34 : vector<1x1x1x4x4x4xbf16> to vector<4x4x4xbf16>
    %36 = vector.shape_cast %35 : vector<4x4x4xbf16> to vector<16x4xbf16>
    %c5 = arith.constant 5 : index
    %c0_50 = arith.constant 0 : index
    %c0_51 = arith.constant 0 : index
    %37 = vector.load %arg3[%c5, %c0_50, %c0_51] : memref<9x4x128xbf16, #tpu.memory_space<vmem>>, vector<1x4x128xbf16>
    %38 = vector.shape_cast %37 : vector<1x4x128xbf16> to vector<4x128xbf16>
    %cst_52 = arith.constant dense<0.000000e+00> : vector<16x128xf32>
    %39 = tpu.matmul %36, %38, %cst_52 {dimension_numbers = #tpu.dot_dimension_numbers<[1], [0], [0], [1], [0, 0, 1, 1], [], []>} : vector<16x4xbf16>, vector<4x128xbf16>, vector<16x128xf32> -> vector<16x128xf32>
    %40 = arith.addf %33, %39 : vector<16x128xf32>
    %c0_53 = arith.constant 0 : index
    %c0_54 = arith.constant 0 : index
    %c0_55 = arith.constant 0 : index
    %c1_56 = arith.constant 1 : index
    %c0_57 = arith.constant 0 : index
    %c0_58 = arith.constant 0 : index
    %41 = vector.load %arg2[%c0_53, %c0_54, %c0_55, %c1_56, %c0_57, %c0_58] : memref<1x2x2x5x5x4xbf16, #tpu.memory_space<vmem>>, vector<1x1x1x4x4x4xbf16>
    %42 = vector.shape_cast %41 : vector<1x1x1x4x4x4xbf16> to vector<4x4x4xbf16>
    %43 = vector.shape_cast %42 : vector<4x4x4xbf16> to vector<16x4xbf16>
    %c6 = arith.constant 6 : index
    %c0_59 = arith.constant 0 : index
    %c0_60 = arith.constant 0 : index
    %44 = vector.load %arg3[%c6, %c0_59, %c0_60] : memref<9x4x128xbf16, #tpu.memory_space<vmem>>, vector<1x4x128xbf16>
    %45 = vector.shape_cast %44 : vector<1x4x128xbf16> to vector<4x128xbf16>
    %cst_61 = arith.constant dense<0.000000e+00> : vector<16x128xf32>
    %46 = tpu.matmul %43, %45, %cst_61 {dimension_numbers = #tpu.dot_dimension_numbers<[1], [0], [0], [1], [0, 0, 1, 1], [], []>} : vector<16x4xbf16>, vector<4x128xbf16>, vector<16x128xf32> -> vector<16x128xf32>
    %47 = arith.addf %40, %46 : vector<16x128xf32>
    %c0_62 = arith.constant 0 : index
    %c0_63 = arith.constant 0 : index
    %c1_64 = arith.constant 1 : index
    %c1_65 = arith.constant 1 : index
    %c0_66 = arith.constant 0 : index
    %c0_67 = arith.constant 0 : index
    %48 = vector.load %arg2[%c0_62, %c0_63, %c1_64, %c1_65, %c0_66, %c0_67] : memref<1x2x2x5x5x4xbf16, #tpu.memory_space<vmem>>, vector<1x1x1x4x4x4xbf16>
    %49 = vector.shape_cast %48 : vector<1x1x1x4x4x4xbf16> to vector<4x4x4xbf16>
    %50 = vector.shape_cast %49 : vector<4x4x4xbf16> to vector<16x4xbf16>
    %c7 = arith.constant 7 : index
    %c0_68 = arith.constant 0 : index
    %c0_69 = arith.constant 0 : index
    %51 = vector.load %arg3[%c7, %c0_68, %c0_69] : memref<9x4x128xbf16, #tpu.memory_space<vmem>>, vector<1x4x128xbf16>
    %52 = vector.shape_cast %51 : vector<1x4x128xbf16> to vector<4x128xbf16>
    %cst_70 = arith.constant dense<0.000000e+00> : vector<16x128xf32>
    %53 = tpu.matmul %50, %52, %cst_70 {dimension_numbers = #tpu.dot_dimension_numbers<[1], [0], [0], [1], [0, 0, 1, 1], [], []>} : vector<16x4xbf16>, vector<4x128xbf16>, vector<16x128xf32> -> vector<16x128xf32>
    %54 = arith.addf %47, %53 : vector<16x128xf32>
    %c0_71 = arith.constant 0 : index
    %c0_72 = arith.constant 0 : index
    %c0_73 = arith.constant 0 : index
    %c1_74 = arith.constant 1 : index
    %c1_75 = arith.constant 1 : index
    %c0_76 = arith.constant 0 : index
    %55 = vector.load %arg2[%c0_71, %c0_72, %c0_73, %c1_74, %c1_75, %c0_76] : memref<1x2x2x5x5x4xbf16, #tpu.memory_space<vmem>>, vector<1x1x1x4x4x4xbf16>
    %56 = vector.shape_cast %55 : vector<1x1x1x4x4x4xbf16> to vector<4x4x4xbf16>
    %57 = vector.shape_cast %56 : vector<4x4x4xbf16> to vector<16x4xbf16>
    %c8 = arith.constant 8 : index
    %c0_77 = arith.constant 0 : index
    %c0_78 = arith.constant 0 : index
    %58 = vector.load %arg3[%c8, %c0_77, %c0_78] : memref<9x4x128xbf16, #tpu.memory_space<vmem>>, vector<1x4x128xbf16>
    %59 = vector.shape_cast %58 : vector<1x4x128xbf16> to vector<4x128xbf16>
    %cst_79 = arith.constant dense<0.000000e+00> : vector<16x128xf32>
    %60 = tpu.matmul %57, %59, %cst_79 {dimension_numbers = #tpu.dot_dimension_numbers<[1], [0], [0], [1], [0, 0, 1, 1], [], []>} : vector<16x4xbf16>, vector<4x128xbf16>, vector<16x128xf32> -> vector<16x128xf32>
    %61 = arith.addf %54, %60 : vector<16x128xf32>
    %c0_80 = arith.constant 0 : index
    %c0_81 = arith.constant 0 : index
    %62 = vector.load %arg4[%c0_80, %c0_81] : memref<1x128xf32, #tpu.memory_space<vmem>>, vector<1x128xf32>
    %63 = vector.broadcast %62 : vector<1x128xf32> to vector<16x128xf32>
    %64 = arith.addf %61, %63 : vector<16x128xf32>
    %cst_82 = arith.constant 0.000000e+00 : f32
    %65 = vector.broadcast %cst_82 : f32 to vector<16x128xf32>
    %66 = arith.maximumf %64, %65 : vector<16x128xf32>
    %67 = arith.truncf %66 : vector<16x128xf32> to vector<16x128xbf16>
    %c0_83 = arith.constant 0 : index
    %c0_84 = arith.constant 0 : index
    %c0_85 = arith.constant 0 : index
    %68 = vector.load %arg5[%c0_83, %c0_84, %c0_85] : memref<1x16x128xbf16, #tpu.memory_space<vmem>>, vector<1x16x128xbf16>
    %69 = vector.shape_cast %68 : vector<1x16x128xbf16> to vector<16x128xbf16>
    %70 = vector.shape_cast %67 : vector<16x128xbf16> to vector<1x16x128xbf16>
    tpu.vector_store %arg5[%c0_83, %c0_84, %c0_85], %70 {strides = array<i32>} : memref<1x16x128xbf16, #tpu.memory_space<vmem>>, vector<1x16x128xbf16>,
    return
  }
  func.func @transform_0(%arg0: i32, %arg1: i32) -> (i32, i32, i32, i32, i32, i32) {
    %c0_i32 = arith.constant 0 : i32
    %c0_i32_0 = arith.constant 0 : i32
    %c0_i32_1 = arith.constant 0 : i32
    %c0_i32_2 = arith.constant 0 : i32
    %c0_i32_3 = arith.constant 0 : i32
    %c0_i32_4 = arith.constant 0 : i32
    return %arg0, %c0_i32, %c0_i32_0, %c0_i32_1, %c0_i32_2, %c0_i32_3 : i32, i32, i32, i32, i32, i32
  }
  func.func @transform_1(%arg0: i32, %arg1: i32) -> (i32, i32, i32) {
    %c0_i32 = arith.constant 0 : i32
    %c0_i32_0 = arith.constant 0 : i32
    %c0_i32_1 = arith.constant 0 : i32
    return %c0_i32, %c0_i32_0, %arg1 : i32, i32, i32
  }
  func.func @transform_2(%arg0: i32, %arg1: i32) -> (i32, i32) {
    %c0_i32 = arith.constant 0 : i32
    %c0_i32_0 = arith.constant 0 : i32
    return %c0_i32, %arg1 : i32, i32
  }
  func.func @transform_3(%arg0: i32, %arg1: i32) -> (i32, i32, i32) {
    %c0_i32 = arith.constant 0 : i32
    %c0_i32_0 = arith.constant 0 : i32
    return %arg0, %c0_i32, %arg1 : i32, i32, i32
  }
}

module attributes {stable_mosaic.version = 11 : i64} {
  func.func @_matmul_bn_kernel(%arg0: i32, %arg1: i32, %arg2: i32, %arg3: memref<32x8xbf16, #tpu.memory_space<vmem>>, %arg4: memref<8x128xbf16, #tpu.memory_space<vmem>>, %arg5: memref<1x128xf32, #tpu.memory_space<vmem>>, %arg6: memref<32x128xf32, #tpu.memory_space<vmem>>, %arg7: memref<32x128xf32, #tpu.memory_space<vmem>>) attributes {dimension_semantics = [#tpu.dimension_semantics<parallel>, #tpu.dimension_semantics<parallel>, #tpu.dimension_semantics<arbitrary>], iteration_bounds = array<i64: 1, 1, 1>, scalar_prefetch = 0 : i64, scratch_operands = 1 : i64, tpu.core_type = #tpu.core_type<tc>, window_params = [{transform_indices = @transform_0, window_bounds = array<i64: 32, 8>}, {transform_indices = @transform_1, window_bounds = array<i64: 8, 128>}, {transform_indices = @transform_2, window_bounds = array<i64: 1, 128>}, {transform_indices = @transform_3, window_bounds = array<i64: 32, 128>}]} {
    %c0_i32 = arith.constant 0 : i32
    %0 = arith.cmpi eq, %arg2, %c0_i32 : i32
    %1 = arith.extui %0 : i1 to i32
    %c0_i32_0 = arith.constant 0 : i32
    %2 = arith.cmpi ne, %1, %c0_i32_0 : i32
    scf.if %2 {
      %cst_10 = arith.constant 0.000000e+00 : f32
      %12 = vector.broadcast %cst_10 : f32 to vector<32x128xf32>
      %c0_11 = arith.constant 0 : index
      %c0_12 = arith.constant 0 : index
      %13 = vector.load %arg7[%c0_11, %c0_12] : memref<32x128xf32, #tpu.memory_space<vmem>>, vector<32x128xf32>
      tpu.vector_store %arg7[%c0_11, %c0_12], %12 {strides = array<i32>} : memref<32x128xf32, #tpu.memory_space<vmem>>, vector<32x128xf32>,
    } else {
    }
    %c0 = arith.constant 0 : index
    %c0_1 = arith.constant 0 : index
    %3 = vector.load %arg7[%c0, %c0_1] : memref<32x128xf32, #tpu.memory_space<vmem>>, vector<32x128xf32>
    %c0_2 = arith.constant 0 : index
    %c0_3 = arith.constant 0 : index
    %4 = vector.load %arg3[%c0_2, %c0_3] : memref<32x8xbf16, #tpu.memory_space<vmem>>, vector<32x8xbf16>
    %c0_4 = arith.constant 0 : index
    %c0_5 = arith.constant 0 : index
    %5 = vector.load %arg4[%c0_4, %c0_5] : memref<8x128xbf16, #tpu.memory_space<vmem>>, vector<8x128xbf16>
    %cst = arith.constant dense<0.000000e+00> : vector<32x128xf32>
    %6 = tpu.matmul %4, %5, %cst {dimension_numbers = #tpu.dot_dimension_numbers<[1], [0], [0], [1], [0, 0, 1, 1], [], []>} : vector<32x8xbf16>, vector<8x128xbf16>, vector<32x128xf32> -> vector<32x128xf32>
    %7 = arith.addf %3, %6 : vector<32x128xf32>
    %c0_6 = arith.constant 0 : index
    %c0_7 = arith.constant 0 : index
    %8 = vector.load %arg7[%c0_6, %c0_7] : memref<32x128xf32, #tpu.memory_space<vmem>>, vector<32x128xf32>
    tpu.vector_store %arg7[%c0_6, %c0_7], %7 {strides = array<i32>} : memref<32x128xf32, #tpu.memory_space<vmem>>, vector<32x128xf32>,
    %c0_i32_8 = arith.constant 0 : i32
    %9 = arith.cmpi eq, %arg2, %c0_i32_8 : i32
    %10 = arith.extui %9 : i1 to i32
    %c0_i32_9 = arith.constant 0 : i32
    %11 = arith.cmpi ne, %10, %c0_i32_9 : i32
    scf.if %11 {
      %c0_10 = arith.constant 0 : index
      %c0_11 = arith.constant 0 : index
      %12 = vector.load %arg7[%c0_10, %c0_11] : memref<32x128xf32, #tpu.memory_space<vmem>>, vector<32x128xf32>
      %c0_12 = arith.constant 0 : index
      %c0_13 = arith.constant 0 : index
      %13 = vector.load %arg5[%c0_12, %c0_13] : memref<1x128xf32, #tpu.memory_space<vmem>>, vector<1x128xf32>
      %14 = vector.broadcast %13 : vector<1x128xf32> to vector<32x128xf32>
      %15 = arith.addf %12, %14 : vector<32x128xf32>
      %c0_14 = arith.constant 0 : index
      %c0_15 = arith.constant 0 : index
      %16 = vector.load %arg6[%c0_14, %c0_15] : memref<32x128xf32, #tpu.memory_space<vmem>>, vector<32x128xf32>
      tpu.vector_store %arg6[%c0_14, %c0_15], %15 {strides = array<i32>} : memref<32x128xf32, #tpu.memory_space<vmem>>, vector<32x128xf32>,
    } else {
    }
    return
  }
  func.func @transform_0(%arg0: i32, %arg1: i32, %arg2: i32) -> (i32, i32) {
    %c0_i32 = arith.constant 0 : i32
    return %arg0, %arg2 : i32, i32
  }
  func.func @transform_1(%arg0: i32, %arg1: i32, %arg2: i32) -> (i32, i32) {
    %c0_i32 = arith.constant 0 : i32
    return %arg2, %arg1 : i32, i32
  }
  func.func @transform_2(%arg0: i32, %arg1: i32, %arg2: i32) -> (i32, i32) {
    %c0_i32 = arith.constant 0 : i32
    %c0_i32_0 = arith.constant 0 : i32
    return %c0_i32, %arg1 : i32, i32
  }
  func.func @transform_3(%arg0: i32, %arg1: i32, %arg2: i32) -> (i32, i32) {
    %c0_i32 = arith.constant 0 : i32
    return %arg0, %arg1 : i32, i32
  }
}

module attributes {stable_mosaic.version = 11 : i64} {
  func.func @_matmul_bn_res_kernel(%arg0: i32, %arg1: i32, %arg2: i32, %arg3: memref<32x4xbf16, #tpu.memory_space<vmem>>, %arg4: memref<4x128xbf16, #tpu.memory_space<vmem>>, %arg5: memref<1x128xf32, #tpu.memory_space<vmem>>, %arg6: memref<32x128xf32, #tpu.memory_space<vmem>>, %arg7: memref<32x128xf32, #tpu.memory_space<vmem>>, %arg8: memref<32x128xf32, #tpu.memory_space<vmem>>) attributes {dimension_semantics = [#tpu.dimension_semantics<parallel>, #tpu.dimension_semantics<parallel>, #tpu.dimension_semantics<arbitrary>], iteration_bounds = array<i64: 1, 1, 1>, scalar_prefetch = 0 : i64, scratch_operands = 1 : i64, tpu.core_type = #tpu.core_type<tc>, window_params = [{transform_indices = @transform_0, window_bounds = array<i64: 32, 4>}, {transform_indices = @transform_1, window_bounds = array<i64: 4, 128>}, {transform_indices = @transform_2, window_bounds = array<i64: 1, 128>}, {transform_indices = @transform_3, window_bounds = array<i64: 32, 128>}, {transform_indices = @transform_4, window_bounds = array<i64: 32, 128>}]} {
    %c0_i32 = arith.constant 0 : i32
    %0 = arith.cmpi eq, %arg2, %c0_i32 : i32
    %1 = arith.extui %0 : i1 to i32
    %c0_i32_0 = arith.constant 0 : i32
    %2 = arith.cmpi ne, %1, %c0_i32_0 : i32
    scf.if %2 {
      %cst_10 = arith.constant 0.000000e+00 : f32
      %12 = vector.broadcast %cst_10 : f32 to vector<32x128xf32>
      %c0_11 = arith.constant 0 : index
      %c0_12 = arith.constant 0 : index
      %13 = vector.load %arg8[%c0_11, %c0_12] : memref<32x128xf32, #tpu.memory_space<vmem>>, vector<32x128xf32>
      tpu.vector_store %arg8[%c0_11, %c0_12], %12 {strides = array<i32>} : memref<32x128xf32, #tpu.memory_space<vmem>>, vector<32x128xf32>,
    } else {
    }
    %c0 = arith.constant 0 : index
    %c0_1 = arith.constant 0 : index
    %3 = vector.load %arg8[%c0, %c0_1] : memref<32x128xf32, #tpu.memory_space<vmem>>, vector<32x128xf32>
    %c0_2 = arith.constant 0 : index
    %c0_3 = arith.constant 0 : index
    %4 = vector.load %arg3[%c0_2, %c0_3] : memref<32x4xbf16, #tpu.memory_space<vmem>>, vector<32x4xbf16>
    %c0_4 = arith.constant 0 : index
    %c0_5 = arith.constant 0 : index
    %5 = vector.load %arg4[%c0_4, %c0_5] : memref<4x128xbf16, #tpu.memory_space<vmem>>, vector<4x128xbf16>
    %cst = arith.constant dense<0.000000e+00> : vector<32x128xf32>
    %6 = tpu.matmul %4, %5, %cst {dimension_numbers = #tpu.dot_dimension_numbers<[1], [0], [0], [1], [0, 0, 1, 1], [], []>} : vector<32x4xbf16>, vector<4x128xbf16>, vector<32x128xf32> -> vector<32x128xf32>
    %7 = arith.addf %3, %6 : vector<32x128xf32>
    %c0_6 = arith.constant 0 : index
    %c0_7 = arith.constant 0 : index
    %8 = vector.load %arg8[%c0_6, %c0_7] : memref<32x128xf32, #tpu.memory_space<vmem>>, vector<32x128xf32>
    tpu.vector_store %arg8[%c0_6, %c0_7], %7 {strides = array<i32>} : memref<32x128xf32, #tpu.memory_space<vmem>>, vector<32x128xf32>,
    %c0_i32_8 = arith.constant 0 : i32
    %9 = arith.cmpi eq, %arg2, %c0_i32_8 : i32
    %10 = arith.extui %9 : i1 to i32
    %c0_i32_9 = arith.constant 0 : i32
    %11 = arith.cmpi ne, %10, %c0_i32_9 : i32
    scf.if %11 {
      %c0_10 = arith.constant 0 : index
      %c0_11 = arith.constant 0 : index
      %12 = vector.load %arg8[%c0_10, %c0_11] : memref<32x128xf32, #tpu.memory_space<vmem>>, vector<32x128xf32>
      %c0_12 = arith.constant 0 : index
      %c0_13 = arith.constant 0 : index
      %13 = vector.load %arg5[%c0_12, %c0_13] : memref<1x128xf32, #tpu.memory_space<vmem>>, vector<1x128xf32>
      %14 = vector.broadcast %13 : vector<1x128xf32> to vector<32x128xf32>
      %15 = arith.addf %12, %14 : vector<32x128xf32>
      %c0_14 = arith.constant 0 : index
      %c0_15 = arith.constant 0 : index
      %16 = vector.load %arg6[%c0_14, %c0_15] : memref<32x128xf32, #tpu.memory_space<vmem>>, vector<32x128xf32>
      %17 = arith.addf %15, %16 : vector<32x128xf32>
      %cst_16 = arith.constant 0.000000e+00 : f32
      %18 = vector.broadcast %cst_16 : f32 to vector<32x128xf32>
      %19 = arith.maximumf %17, %18 : vector<32x128xf32>
      %c0_17 = arith.constant 0 : index
      %c0_18 = arith.constant 0 : index
      %20 = vector.load %arg7[%c0_17, %c0_18] : memref<32x128xf32, #tpu.memory_space<vmem>>, vector<32x128xf32>
      tpu.vector_store %arg7[%c0_17, %c0_18], %19 {strides = array<i32>} : memref<32x128xf32, #tpu.memory_space<vmem>>, vector<32x128xf32>,
    } else {
    }
    return
  }
  func.func @transform_0(%arg0: i32, %arg1: i32, %arg2: i32) -> (i32, i32) {
    %c0_i32 = arith.constant 0 : i32
    return %arg0, %arg2 : i32, i32
  }
  func.func @transform_1(%arg0: i32, %arg1: i32, %arg2: i32) -> (i32, i32) {
    %c0_i32 = arith.constant 0 : i32
    return %arg2, %arg1 : i32, i32
  }
  func.func @transform_2(%arg0: i32, %arg1: i32, %arg2: i32) -> (i32, i32) {
    %c0_i32 = arith.constant 0 : i32
    %c0_i32_0 = arith.constant 0 : i32
    return %c0_i32, %arg1 : i32, i32
  }
  func.func @transform_3(%arg0: i32, %arg1: i32, %arg2: i32) -> (i32, i32) {
    %c0_i32 = arith.constant 0 : i32
    return %arg0, %arg1 : i32, i32
  }
  func.func @transform_4(%arg0: i32, %arg1: i32, %arg2: i32) -> (i32, i32) {
    %c0_i32 = arith.constant 0 : i32
    return %arg0, %arg1 : i32, i32
  }
}

</mosaic_0001>

<bundles_post_ra>
// kernel: bottleneck_forward.4
= control target key start
LH: loop header
LB: loop body
LE: loop exit
PB: predicated region body
PF: predicated region fallthrough
CT: control target
= control target key end

     0   :  { %vm133_vm0 = vcmask 1043456   ;;  %vm108_vm1 = vcmask 64512   ;;  %s625_s1 = inlined_call_operand.vmem [shape: bf16[8,128], index: 1, kind: input, shape index: {}]   ;;  %s626_s0 = inlined_call_operand.vmem [shape: bf16[128,8], index: 0, kind: input, shape index: {}]   ;;  %s627_s2 = inlined_call_operand.vmem [shape: f32[1,128], index: 2, kind: input, shape index: {}]   ;;  %s628_s3 = inlined_call_operand.vmem [shape: bf16[128,128], index: 3, kind: output, shape index: {}]  }
   0x1   :  { %v67_v0 = vld [vmem:[%s625_s1] sm:$0xf]  ;;  %v537_v4 = vld [vmem:[%s626_s0 + $0x8] sm:$0xff]   ;;  %v539_v6 = vld [vmem:[%s626_s0 + $0x10] sm:$0xff]  }
   0x2   :  { %533 = vmatprep.subr.msk.bf16.mxu0 %vm133_vm0, %v67_v0  ;;  %534 = vmatprep.subr.msk.bf16.mxu1 %vm133_vm0, %v67_v0  ;;  %v135_v1 = vsel %vm133_vm0, %v67_v0, 0  ;;  %v535_v2 = vld [vmem:[%s626_s0] sm:$0xff]   ;;  %v538_v5 = vld [vmem:[%s626_s0 + $0x28] sm:$0xff]   ;;  %v540_v7 = vld [vmem:[%s626_s0 + $0x30] sm:$0xff]  }
   0x3   :  { %514 = vmatpush3.bf16.msra.mxu0 %v135_v1  ;;  %532 = vmatpush3.bf16.msra.mxu1 %v135_v1  ;;  %v536_v3 = vld [vmem:[%s626_s0 + $0x20] sm:$0xff]   ;;  %v541_v8 = vld [vmem:[%s626_s0 + $0x18] sm:$0xff]  }
   0x4   :  { %515 = vmatprep.mubr.msk.bf16.mxu0 %vm108_vm1, %v535_v2  ;;  %523 = vmatprep.mubr.msk.bf16.mxu1 %vm108_vm1, %v536_v3  ;;  %v542_v9 = vld [vmem:[%s626_s0 + $0x38] sm:$0xff]   ;;  %v424_v11 = vld [vmem:[%s627_s2] ss:$0 sm:$0xff] }
   0x6   :  { %516 = vmatmul.mubr.msk.bf16.vlgmr.msra.gmra.mxu0 %vm108_vm1, %v537_v4  ;;  %524 = vmatmul.mubr.msk.bf16.vlgmr.msra.gmra.mxu1 %vm108_vm1, %v538_v5 }
   0x7   :  { %519 = vmatprep.mubr.msk.bf16.mxu0 %vm108_vm1, %v539_v6  ;;  %527 = vmatprep.mubr.msk.bf16.mxu1 %vm108_vm1, %v540_v7 }
   0xe   :  { %520 = vmatmul.mubr.msk.bf16.gmra.mxu0 %vm108_vm1, %v541_v8  ;;  %528 = vmatmul.mubr.msk.bf16.gmra.mxu1 %vm108_vm1, %v542_v9 }
  0xc6   :  { %v517_v10 = vpop.f32.mrf.mxu0  ;;  %v525_v12 = vpop.f32.mrf.mxu1 }
  0xc7   :  { %v294_v14 = vadd.f32 %v517_v10, %v424_v11  ;;  %v302_v16 = vadd.f32 %v525_v12, %v424_v11 }
  0xc8   :  { %v171_v13 = vpop.f32.mrf.mxu0  ;;  %v203_v15 = vpop.f32.mrf.mxu1 }
  0xc9   :  { %v292_v18 = vadd.f32 %v424_v11, %v171_v13  ;;  %v300_v21 = vadd.f32 %v424_v11, %v203_v15  ;;  %v310_v24 = vmax.f32 %v294_v14, 0.0  ;;  %v318_v28 = vmax.f32 %v302_v16, 0.0 }
  0xca   :  { %v518_v17 = vpop.f32.mrf.mxu0  ;;  %v526_v20 = vpop.f32.mrf.mxu1 }
  0xcb   :  { %v295_v19 = vadd.f32 %v518_v17, %v424_v11  ;;  %v303_v22 = vadd.f32 %v526_v20, %v424_v11  ;;  %v308_v32 = vmax.f32 %v292_v18, 0.0  ;;  %v316_v36 = vmax.f32 %v300_v21, 0.0 }
  0xcc   :  { %v174_v23 = vpop.f32.mrf.mxu0  ;;  %v206_v27 = vpop.f32.mrf.mxu1 }
  0xcd   :  { %v311_v25 = vmax.f32 %v295_v19, 0.0  ;;  %v293_v26 = vadd.f32 %v424_v11, %v174_v23  ;;  %v319_v29 = vmax.f32 %v303_v22, 0.0  ;;  %v301_v30 = vadd.f32 %v424_v11, %v206_v27 }
  0xce   :  { %v521_v31 = vpop.f32.mrf.mxu0  ;;  %v529_v35 = vpop.f32.mrf.mxu1 }
  0xcf   :  { %v465_v33 = vpack.c.bf16 %v311_v25, %v310_v24  ;;  %v309_v34 = vmax.f32 %v293_v26, 0.0  ;;  %v485_v37 = vpack.c.bf16 %v319_v29, %v318_v28  ;;  %v317_v38 = vmax.f32 %v301_v30, 0.0 }
  0xd0   :  { %v187_v39 = vpop.f32.mrf.mxu0  ;;  %v298_v41 = vadd.f32 %v521_v31, %v424_v11  ;;  %v219_v42 = vpop.f32.mrf.mxu1  ;;  %v306_v44 = vadd.f32 %v529_v35, %v424_v11 }
  0xd1   :  { %497 = vst [vmem:[%s628_s3 + $0x8] sm:$0xff] %v465_v33   ;;  %v460_v40 = vpack.c.bf16 %v309_v34, %v308_v32  ;;  %501 = vst [vmem:[%s628_s3 + $0x28] sm:$0xff] %v485_v37   ;;  %v480_v43 = vpack.c.bf16 %v317_v38, %v316_v36  ;;  %v296_v46 = vadd.f32 %v424_v11, %v187_v39 }
  0xd2   :  { %v522_v45 = vpop.f32.mrf.mxu0  ;;  %v530_v48 = vpop.f32.mrf.mxu1  ;;  %v304_v49 = vadd.f32 %v424_v11, %v219_v42  ;;  %v314_v52 = vmax.f32 %v298_v41, 0.0  ;;  %v322_v56 = vmax.f32 %v306_v44, 0.0 }
  0xd3   :  { %461 = vst [vmem:[%s628_s3] sm:$0xff] %v460_v40   ;;  %v299_v47 = vadd.f32 %v522_v45, %v424_v11  ;;  %500 = vst [vmem:[%s628_s3 + $0x20] sm:$0xff] %v480_v43   ;;  %v307_v50 = vadd.f32 %v530_v48, %v424_v11  ;;  %v312_v59 = vmax.f32 %v296_v46, 0.0 }
  0xd4   :  { %v190_v51 = vpop.f32.mrf.mxu0  ;;  %v222_v55 = vpop.f32.mrf.mxu1  ;;  %v320_v62 = vmax.f32 %v304_v49, 0.0 }
  0xd5   :  { %v315_v53 = vmax.f32 %v299_v47, 0.0  ;;  %v297_v54 = vadd.f32 %v424_v11, %v190_v51  ;;  %v323_v57 = vmax.f32 %v307_v50, 0.0  ;;  %v305_v58 = vadd.f32 %v424_v11, %v222_v55 }
  0xd7   :  { %v475_v60 = vpack.c.bf16 %v315_v53, %v314_v52  ;;  %v313_v61 = vmax.f32 %v297_v54, 0.0  ;;  %v495_v63 = vpack.c.bf16 %v323_v57, %v322_v56  ;;  %v321_v0 = vmax.f32 %v305_v58, 0.0 }
  0xd9   :  { %499 = vst [vmem:[%s628_s3 + $0x18] sm:$0xff] %v475_v60   ;;  %v470_v1 = vpack.c.bf16 %v313_v61, %v312_v59  ;;  %503 = vst [vmem:[%s628_s3 + $0x38] sm:$0xff] %v495_v63   ;;  %v490_v2 = vpack.c.bf16 %v321_v0, %v320_v62 }
  0xdb   :  { %498 = vst [vmem:[%s628_s3 + $0x10] sm:$0xff] %v470_v1   ;;  %502 = vst [vmem:[%s628_s3 + $0x30] sm:$0xff] %v490_v2  }

// kernel: bottleneck_forward.6
= control target key start
LH: loop header
LB: loop body
LE: loop exit
PB: predicated region body
PF: predicated region fallthrough
CT: control target
= control target key end

     0   :  { %vm49_vm0 = vcmask 1043456   ;;  %vm42_vm1 = vcmask 64512   ;;  %s197_s1 = inlined_call_operand.vmem [shape: bf16[8,128], index: 1, kind: input, shape index: {}]   ;;  %s198_s0 = inlined_call_operand.vmem [shape: bf16[32,8], index: 0, kind: input, shape index: {}]   ;;  %s199_s2 = inlined_call_operand.vmem [shape: f32[1,128], index: 2, kind: input, shape index: {}]   ;;  %s200_s3 = inlined_call_operand.vmem [shape: f32[32,128], index: 3, kind: output, shape index: {}]  }
   0x1   :  { %v31_v0 = vld [vmem:[%s197_s1] sm:$0xf]  ;;  %v152_v3 = vld [vmem:[%s198_s0 + $0x8] sm:$0xff]  }
   0x2   :  { %150 = vmatprep.subr.msk.bf16.mxu0 %vm49_vm0, %v31_v0  ;;  %v51_v1 = vsel %vm49_vm0, %v31_v0, 0  ;;  %v151_v2 = vld [vmem:[%s198_s0] sm:$0xff]  }
   0x3   :  { %145 = vmatpush3.bf16.msra.mxu0 %v51_v1  ;;  %146 = vmatprep.mubr.msk.bf16.mxu0 %vm42_vm1, %v151_v2  ;;  %v140_v4 = vld [vmem:[%s199_s2] ss:$0 sm:$0xff] }
   0x6   :  { %147 = vmatmul.mubr.msk.bf16.vlgmr.msra.gmra.mxu0 %vm42_vm1, %v152_v3 }
  0xc6   :  { %v148_v5 = vpop.f32.mrf.mxu0 }
  0xc7   :  { %v126_v6 = vadd.f32 %v148_v5, %v140_v4 }
  0xc8   :  { %v87_v7 = vpop.f32.mrf.mxu0 }
  0xc9   :  { %130 = vst [vmem:[%s200_s3 + $0x10] sm:$0xff] %v126_v6  ;;  %v124_v8 = vadd.f32 %v140_v4, %v87_v7 }
  0xca   :  { %v149_v9 = vpop.f32.mrf.mxu0 }
  0xcb   :  { %128 = vst [vmem:[%s200_s3] sm:$0xff] %v124_v8  ;;  %v127_v10 = vadd.f32 %v149_v9, %v140_v4 }
  0xcc   :  { %v90_v11 = vpop.f32.mrf.mxu0 }
  0xcd   :  { %131 = vst [vmem:[%s200_s3 + $0x18] sm:$0xff] %v127_v10  ;;  %v125_v12 = vadd.f32 %v140_v4, %v90_v11 }
  0xcf   :  { %129 = vst [vmem:[%s200_s3 + $0x8] sm:$0xff] %v125_v12 }

// kernel: bottleneck_forward.5
= control target key start
LH: loop header
LB: loop body
LE: loop exit
PB: predicated region body
PF: predicated region fallthrough
CT: control target
= control target key end

     0   :  { %s1557_s12 = smov 0   ;;  %s1559_s13 = smov 0   ;;  %s1745_s0 = inlined_call_operand.vmem [shape: bf16[2,2,2,5,5,4], index: 0, kind: input, shape index: {}]   ;;  %s1746_s1 = inlined_call_operand.vmem [shape: bf16[9,4,128], index: 1, kind: input, shape index: {}]   ;;  %s1747_s2 = inlined_call_operand.vmem [shape: f32[1,128], index: 2, kind: input, shape index: {}]   ;;  %s1748_s3 = inlined_call_operand.vmem [shape: bf16[2,16,128], index: 3, kind: output, shape index: {}]  }
   0x1   :  { %s1561_s14 = smov 0  }
   0x2 LB: > { %s25_s15 = sadd.s32 1, %s1528_s13  ;;  %p1312_p0 = scmp.ge.s32.totalorder %s1532_s14, 1  ;;  %s1532_s14 = sphi %s1561_s14, %s13_s14   ;;  %s1528_s13 = sphi %s1559_s13, %s1754_s13   ;;  %s1524_s12 = sphi %s1557_s12, %s1753_s12  }
   0x3   : > { %p27_p1 = scmp.ge.s32.totalorder %s25_s15, 2  ;;  %p168_p2 = scmp.lt.s32.totalorder %s1532_s14, 3 }
   0x5   : > { %s1756_s15 = smov (%p27_p1, %s25_s15), 0  ;;  %p169_p3 = pnand %p1312_p0, %p168_p2 }
   0x6   : > { %p202_p4 = scmp.lt.s32.totalorder (!%p169_p3), %s1524_s12, 1 }
   0x7   : > { %172 = sbr.rel (%p169_p3) target bundleno = 273 (0x111), region = 32 }
   0xc   : > { %v1320_v0 = vld [vmem:[%s1746_s1 + $0x2] sm:$0x3]  ;;  %vm260_vm0 = vcmask 1041408   ;;  %v227_v1 = vld [vmem:[%s1746_s1] sm:$0x3]  ;;  %v244_v2 = vlaneseq  ;;  %v1534_v3 = vmov 0.0  }
   0xd   : > { %1404 = vmatprep.subr.bf16.mxu0 %v1534_v3  ;;  %1410 = vmatprep.subr.bf16.mxu1 %v1534_v3  ;;  %v262_v4 = vsel %vm260_vm0, %v1320_v0, 0  ;;  %v330_v5 = vsel %vm260_vm0, %v227_v1, 0  ;;  %v1535_v6 = vmov 1983009808   ;;  %vm1536_vm1 = vmmov 0   ;;  %s1758_s12 = smov (!%p202_p4, %s1524_s12), 1 }
   0xe   : > { %1405 = vmatpush3.bf16.msra.mxu0 %v262_v4  ;;  %1411 = vmatpush3.bf16.msra.mxu1 %v330_v5  ;;  %v242_v7 = vunpack.c.l.s4 %v1535_v6  ;;  %v245_v8 = vshrl.u32 %v244_v2, 7  ;;  %v1327_v9 = vld [vmem:[%s1746_s1 + $0x4] sm:$0x3]  ;;  %v1333_v10 = vld [vmem:[%s1746_s1 + $0x6] sm:$0x3]  ;;  %s1458_s24 = smul.u32 80, %s1758_s12 }
   0xf   : > { %1406 = vmatprep.mubr.msk.bf16.mxu0 %vm1536_vm1, %v1534_v3  ;;  %1412 = vmatprep.mubr.msk.bf16.mxu1 %vm1536_vm1, %v1534_v3  ;;  %vm256_vm2 = vcmask 31744   ;;  %v499_v12 = vsel %vm260_vm0, %v1327_v9, 0  ;;  %v576_v13 = vsel %vm260_vm0, %v1333_v10, 0  ;;  %vm413_vm3 = vsmask.f32 1280  ;;  %s1378_s17 = sshll.u32 %s1758_s12, 3 }
  0x10   : > { %v243_v11 = vunpack.c.0.s8 %v242_v7  ;;  %1416 = vmatprep.subr.bf16.mxu0 %v1534_v3  ;;  %1422 = vmatprep.subr.bf16.mxu1 %v1534_v3  ;;  %s1605_s27 = scalar_lea.vmem %s1745_s0, %s1458_s24  ;;  %vm414_vm4 = vsmask.f32 3336  ;;  %vm416_vm5 = vsmask.f32 5392  ;;  %vm418_vm6 = vsmask.f32 7448  ;;  %s221_s20 = scalar_lea.vmem %s1748_s3, %s1378_s17 }
  0x11   : > { %v1498_v15 = vld.sshfl [vmem:[%s1605_s27 + $0x14] sm:$0xf pattern:$0x76325410]  ;;  %vm415_vm7 = vmor %vm413_vm3, %vm414_vm4  ;;  %v1349_v52 = vld [vmem:[%s1746_s1 + $0xa] sm:$0x3] }
  0x12   : > { %v1607_v14 = vsub.s32 %v243_v11, %v245_v8  ;;  %v1499_v16 = vld.sshfl [vmem:[%s1605_s27 + $0x1c] sm:$0xf pattern:$0x76325410]  ;;  %vm1621_vm8 = vmor %vm415_vm7, %vm416_vm5  ;;  %v1339_v57 = vld [vmem:[%s1746_s1 + $0x8] sm:$0x3] }
  0x13   : > { %v1500_v17 = vld.sshfl [vmem:[%s1605_s27] sm:$0xf pattern:$0x76325410]  ;;  %v255_v20 = vcombine.low %v1498_v15, %v1499_v16  ;;  %vm1633_vm9 = vmor %vm1621_vm8, %vm418_vm6  ;;  %v817_v7 = vsel %vm260_vm0, %v1349_v52, 0  ;;  %v653_v11 = vsel %vm260_vm0, %v1339_v57, 0 }
  0x14   : > { %v1501_v18 = vld.sshfl [vmem:[%s1605_s27 + $0x8] sm:$0xf pattern:$0x76325410] }
  0x15   : > { %v1323_v19 = vld.sshfl [vmem:[%s1605_s27] sm:$0x13 pattern:$0x76325410]  ;;  %1407 = vmatmul.mubr.msk.bf16.vlgmr.msra.gmra.mxu0 %vm256_vm2, %v255_v20  ;;  %v325_v27 = vcombine.low %v1500_v17, %v1501_v18 }
  0x16   : > { %v1324_v21 = vld.sshfl [vmem:[%s1605_s27 + $0x4] sm:$0x13 pattern:$0x76325410]  ;;  %v388_v22 = vcombine.high %v1323_v19, %v1323_v19  ;;  %v421_v25 = vshrl.u32 %v1323_v19, 16  ;;  %v424_v26 = vshll.u32 %v1323_v19, 16  ;;  %1417 = vmatpush3.bf16.msra.mxu0 %v499_v12  ;;  %1418 = vmatprep.mubr.msk.bf16.mxu0 %vm1536_vm1, %v1534_v3 }
  0x17   : > { %v1325_v23 = vld.sshfl [vmem:[%s1605_s27 + $0x8] sm:$0x13 pattern:$0x76325410]  ;;  %v396_v24 = vcombine.high %v1324_v21, %v1324_v21  ;;  %v435_v31 = vshrl.u32 %v1324_v21, 16  ;;  %v438_v36 = vshll.u32 %v1324_v21, 16  ;;  %1413 = vmatmul.mubr.msk.bf16.vlgmr.msra.gmra.mxu1 %vm256_vm2, %v325_v27  ;;  %1428 = vmatprep.subr.bf16.mxu0 %v1534_v3 }
  0x18   : > { %v1326_v28 = vld.sshfl [vmem:[%s1605_s27 + $0xc] sm:$0x13 pattern:$0x76325410]  ;;  %v404_v29 = vcombine.high %v1325_v23, %v1325_v23  ;;  %v430_v30 = vshll.u32 %v388_v22, 16  ;;  %v423_v34 = vrot.slane %v421_v25, 6  ;;  %1423 = vmatpush3.bf16.msra.mxu1 %v576_v13  ;;  %1424 = vmatprep.mubr.msk.bf16.mxu1 %vm1536_vm1, %v1534_v3 }
  0x19   : > { %v412_v32 = vcombine.high %v1326_v28, %v1326_v28  ;;  %v426_v35 = vrot.slane %v424_v26, 7  ;;  %v437_v38 = vrot.slane %v435_v31, 6  ;;  %v444_v39 = vshll.u32 %v396_v24, 16  ;;  %1434 = vmatprep.subr.bf16.mxu1 %v1534_v3 }
  0x1a   : > { %v432_v37 = vrot.slane %v430_v30, 7  ;;  %v449_v40 = vshrl.u32 %v1325_v23, 16  ;;  %v440_v42 = vrot.slane %v438_v36, 7  ;;  %v452_v43 = vshll.u32 %v1325_v23, 16 }
  0x1b   : > { %v427_v41 = vor.u32 %v426_v35, %v423_v34  ;;  %v458_v44 = vshll.u32 %v404_v29, 16  ;;  %v1502_v45 = vld.sshfl [vmem:[%s1605_s27 + $0x28] sm:$0xf pattern:$0x76325410]  ;;  %v446_v47 = vrot.slane %v444_v39, 7 }
  0x1c   : > { %v451_v48 = vrot.slane %v449_v40, 6  ;;  %v463_v49 = vshrl.u32 %v1326_v28, 16  ;;  %v466_v50 = vshll.u32 %v1326_v28, 16  ;;  %v441_v54 = vor.u32 %v440_v42, %v437_v38 }
  0x1d   : > { %v1503_v51 = vld.sshfl [vmem:[%s1605_s27 + $0x30] sm:$0xf pattern:$0x76325410]  ;;  %v428_v53 = vrot.slane %v427_v41, 2  ;;  %v454_v55 = vrot.slane %v452_v43, 7 }
  0x1e   : > { %v460_v56 = vrot.slane %v458_v44, 7  ;;  %v465_v58 = vrot.slane %v463_v49, 6  ;;  %v468_v59 = vrot.slane %v466_v50, 7  ;;  %v472_v60 = vshll.u32 %v412_v32, 16 }
  0x1f   : > { %v433_v61 = vsel %vm1633_vm9, %v428_v53, %v432_v37  ;;  %v442_v62 = vrot.slane %v441_v54, 2  ;;  %v455_v63 = vor.u32 %v454_v55, %v451_v48  ;;  %v1648_v2 = vld.sshfl [vmem:[%s1605_s27 + $0x3c] sm:$0xf pattern:$0x76325410]  ;;  %v571_v6 = vcombine.low %v1502_v45, %v1503_v51 }
  0x20   : > { %v469_v0 = vor.u32 %v468_v59, %v465_v58  ;;  %v474_v1 = vrot.slane %v472_v60, 7  ;;  %v1345_v8 = vld.sshfl [vmem:[%s1605_s27 + $0x28] sm:$0x13 pattern:$0x76325410] }
  0x21   : > { %v1652_v4 = vsel %vm1633_vm9, %v442_v62, %v446_v47  ;;  %v456_v5 = vrot.slane %v455_v63, 2  ;;  %v1346_v12 = vld.sshfl [vmem:[%s1605_s27 + $0x2c] sm:$0x13 pattern:$0x76325410]  ;;  %1425 = vmatmul.mubr.msk.bf16.vlgmr.msra.gmra.mxu1 %vm256_vm2, %v571_v6  ;;  %v713_v16 = vcombine.high %v1345_v8, %v1345_v8  ;;  %v739_v18 = vshrl.u32 %v1345_v8, 16 }
  0x22   : > { %v470_v9 = vrot.slane %v469_v0, 2  ;;  %v478_v10 = vcombine.low %v433_v61, %v1652_v4  ;;  %v1347_v15 = vld.sshfl [vmem:[%s1605_s27 + $0x30] sm:$0x13 pattern:$0x76325410]  ;;  %v721_v17 = vcombine.high %v1346_v12, %v1346_v12  ;;  %1435 = vmatpush3.bf16.msra.mxu1 %v817_v7  ;;  %1436 = vmatprep.mubr.msk.bf16.mxu1 %vm1536_vm1, %v1534_v3  ;;  %v742_v22 = vshll.u32 %v1345_v8, 16 }
  0x23   : > { %v1661_v13 = vsel %vm1633_vm9, %v456_v5, %v460_v56  ;;  %v1348_v21 = vld.sshfl [vmem:[%s1605_s27 + $0x34] sm:$0x13 pattern:$0x76325410]  ;;  %v729_v25 = vcombine.high %v1347_v15, %v1347_v15  ;;  %v741_v27 = vrot.slane %v739_v18, 6  ;;  %1446 = vmatprep.subr.bf16.mxu1 %v1534_v3  ;;  %v748_v29 = vshll.u32 %v713_v16, 16 }
  0x24   : > { %v1667_v19 = vsel %vm1633_vm9, %v470_v9, %v474_v1  ;;  %v486_v20 = vrot.slane %v478_v10, %v1607_v14  ;;  %v1505_v24 = vld.sshfl [vmem:[%s1605_s27 + $0x44] sm:$0xf pattern:$0x76325410]  ;;  %v737_v26 = vcombine.high %v1348_v21, %v1348_v21  ;;  %v744_v28 = vrot.slane %v742_v22, 7 }
  0x25   : > { %v479_v23 = vcombine.low %v1661_v13, %v1667_v19  ;;  %v753_v30 = vshrl.u32 %v1346_v12, 16  ;;  %v756_v31 = vshll.u32 %v1346_v12, 16  ;;  %v762_v33 = vshll.u32 %v721_v17, 16  ;;  %v1355_v59 = vld [vmem:[%s1746_s1 + $0xc] sm:$0x3] }
  0x26   : > { %v767_v34 = vshrl.u32 %v1347_v15, 16  ;;  %v770_v35 = vshll.u32 %v1347_v15, 16  ;;  %v745_v36 = vor.u32 %v744_v28, %v741_v27  ;;  %v750_v37 = vrot.slane %v748_v29, 7 }
  0x27   : > { %v493_v32 = vrot.slane %v479_v23, %v1607_v14  ;;  %v755_v38 = vrot.slane %v753_v30, 6  ;;  %v758_v39 = vrot.slane %v756_v31, 7  ;;  %v764_v41 = vrot.slane %v762_v33, 7 }
  0x28   : > { %v769_v42 = vrot.slane %v767_v34, 6  ;;  %v772_v43 = vrot.slane %v770_v35, 7  ;;  %v746_v44 = vrot.slane %v745_v36, 2  ;;  %v776_v47 = vshll.u32 %v729_v25, 16 }
  0x29   : > { %v494_v40 = vcombine.low %v486_v20, %v493_v32  ;;  %v759_v45 = vor.u32 %v758_v39, %v755_v38  ;;  %v781_v48 = vshrl.u32 %v1348_v21, 16  ;;  %v784_v50 = vshll.u32 %v1348_v21, 16  ;;  %v1370_v60 = vld.sshfl [vmem:[%s1605_s27 + $0x10] sm:$0x13 pattern:$0x76325410] }
  0x2a   : > { %v773_v49 = vor.u32 %v772_v43, %v769_v42  ;;  %v790_v51 = vshll.u32 %v737_v26, 16  ;;  %v751_v54 = vsel %vm1633_vm9, %v746_v44, %v750_v37  ;;  %v778_v56 = vrot.slane %v776_v47, 7  ;;  %v1506_v0 = vld.sshfl [vmem:[%s1605_s27 + $0x4] sm:$0xf pattern:$0x76325410] }
  0x2b   : > { %1419 = vmatmul.mubr.msk.bf16.vlgmr.msra.gmra.mxu0 %vm256_vm2, %v494_v40  ;;  %v760_v52 = vrot.slane %v759_v45, 2  ;;  %v783_v53 = vrot.slane %v781_v48, 6  ;;  %v786_v57 = vrot.slane %v784_v50, 7  ;;  %v648_v61 = vcombine.low %v1648_v2, %v1505_v24  ;;  %v1361_v20 = vld [vmem:[%s1746_s1 + $0xe] sm:$0x3] }
  0x2c   : > { %1429 = vmatpush3.bf16.msra.mxu0 %v653_v11  ;;  %1430 = vmatprep.mubr.msk.bf16.mxu0 %vm1536_vm1, %v1534_v3  ;;  %v774_v55 = vrot.slane %v773_v49, 2  ;;  %v792_v63 = vrot.slane %v790_v51, 7  ;;  %v1507_v5 = vld.sshfl [vmem:[%s1605_s27 + $0xc] sm:$0xf pattern:$0x76325410]  ;;  %v1055_v6 = vcombine.high %v1370_v60, %v1370_v60  ;;  %v1114_v31 = vcombine.low %v1652_v4, %v1661_v13 }
  0x2d   : > { %1440 = vmatprep.subr.bf16.mxu0 %v1534_v3  ;;  %v765_v58 = vsel %vm1633_vm9, %v760_v52, %v764_v41  ;;  %v787_v62 = vor.u32 %v786_v57, %v783_v53  ;;  %v1099_v7 = vshrl.u32 %v1370_v60, 16  ;;  %v894_v10 = vsel %vm260_vm0, %v1355_v59, 0  ;;  %v1508_v24 = vld.sshfl [vmem:[%s1605_s27 + $0x18] sm:$0xf pattern:$0x76325410] }
  0x2e   : > { %v796_v1 = vcombine.low %v751_v54, %v765_v58  ;;  %v779_v8 = vsel %vm1633_vm9, %v774_v55, %v778_v56  ;;  %v1102_v11 = vshll.u32 %v1370_v60, 16  ;;  %v1108_v15 = vshll.u32 %v1055_v6, 16  ;;  %v1509_v25 = vld.sshfl [vmem:[%s1605_s27 + $0x20] sm:$0xf pattern:$0x76325410] }
  0x2f   : > { %v788_v9 = vrot.slane %v787_v62, 2  ;;  %v1101_v12 = vrot.slane %v1099_v7, 6  ;;  %v1371_v26 = vld [vmem:[%s1746_s1 + $0x10] sm:$0x3]  ;;  %v971_v29 = vsel %vm260_vm0, %v1361_v20, 0  ;;  %v889_v30 = vcombine.low %v1506_v0, %v1507_v5 }
  0x30   : > { %v1104_v16 = vrot.slane %v1102_v11, 7  ;;  %v804_v18 = vrot.slane %v796_v1, %v1607_v14  ;;  %v1110_v22 = vrot.slane %v1108_v15, 7  ;;  %v1135_v33 = vsel %vm260_vm0, %v1371_v26, 0 }
  0x31   : > { %v793_v2 = vsel %vm1633_vm9, %v788_v9, %v792_v63  ;;  %v1122_v35 = vrot.slane %v1114_v31, %v1607_v14  ;;  %v966_v46 = vcombine.low %v1508_v24, %v1509_v25 }
  0x32   : > { %v797_v17 = vcombine.low %v779_v8, %v793_v2  ;;  %v1105_v21 = vor.u32 %v1104_v16, %v1101_v12 }
  0x33   : > { %1431 = vmatmul.mubr.msk.bf16.vlgmr.msra.gmra.mxu0 %vm256_vm2, %v648_v61 }
  0x34   : > { %1441 = vmatpush3.bf16.msra.mxu0 %v894_v10  ;;  %1442 = vmatprep.mubr.msk.bf16.mxu0 %vm1536_vm1, %v1534_v3  ;;  %v811_v23 = vrot.slane %v797_v17, %v1607_v14  ;;  %v1106_v27 = vrot.slane %v1105_v21, 2  ;;  %v1373_v21 = vld [vmem:[%s1747_s2] ss:$0 sm:$0xff] }
  0x35   : > { %1452 = vmatprep.subr.bf16.mxu0 %v1534_v3 }
  0x36   : > { %v812_v28 = vcombine.low %v804_v18, %v811_v23  ;;  %v1111_v32 = vsel %vm1633_vm9, %v1106_v27, %v1110_v22 }
  0x37   : > { %v1115_v34 = vcombine.low %v1667_v19, %v1111_v32 }
  0x38   : > { %1437 = vmatmul.mubr.msk.bf16.vlgmr.msra.gmra.mxu1 %vm256_vm2, %v812_v28 }
  0x39   : > { %1447 = vmatpush3.bf16.msra.mxu1 %v971_v29  ;;  %1448 = vmatprep.mubr.msk.bf16.mxu1 %vm1536_vm1, %v1534_v3  ;;  %v1129_v36 = vrot.slane %v1115_v34, %v1607_v14 }
  0x3b   : > { %1443 = vmatmul.mubr.msk.bf16.vlgmr.msra.gmra.mxu0 %vm256_vm2, %v889_v30  ;;  %v1130_v4 = vcombine.low %v1122_v35, %v1129_v36 }
  0x3c   : > { %1453 = vmatpush3.bf16.msra.mxu0 %v1135_v33  ;;  %1454 = vmatprep.mubr.msk.bf16.mxu0 %vm1536_vm1, %v1534_v3 }
  0x40   : > { %1449 = vmatmul.mubr.msk.bf16.vlgmr.msra.gmra.mxu1 %vm256_vm2, %v966_v46 }
  0x43   : > { %1455 = vmatmul.mubr.msk.bf16.vlgmr.msra.gmra.mxu0 %vm256_vm2, %v1130_v4 }
  0xd5   : > { %v298_v13 = vpop.f32.mrf.mxu0 }
  0xd7   : > { %v366_v19 = vpop.f32.mrf.mxu1  ;;  %v1408_v37 = vpop.f32.mrf.mxu0 }
  0xd8   : > { %v367_v49 = vadd.f32 %v366_v19, %v298_v13 }
  0xd9   : > { %v1414_v38 = vpop.f32.mrf.mxu1  ;;  %v301_v39 = vpop.f32.mrf.mxu0 }
  0xdb   : > { %v369_v40 = vpop.f32.mrf.mxu1  ;;  %v1409_v41 = vpop.f32.mrf.mxu0 }
  0xdc   : > { %v370_v53 = vadd.f32 %v369_v40, %v301_v39 }
  0xdd   : > { %v1415_v42 = vpop.f32.mrf.mxu1 }
  0xe1   : > { %v612_v43 = vpop.f32.mrf.mxu1 }
  0xe3   : > { %v1426_v14 = vpop.f32.mrf.mxu1 }
  0xe5   : > { %v615_v44 = vpop.f32.mrf.mxu1 }
  0xe7   : > { %v1427_v45 = vpop.f32.mrf.mxu1 }
  0xeb   : > { %v535_v47 = vpop.f32.mrf.mxu0 }
  0xec   : > { %v542_v51 = vadd.f32 %v535_v47, %v367_v49 }
  0xed   : > { %v1420_v3 = vpop.f32.mrf.mxu0 }
  0xee   : > { %v619_v55 = vadd.f32 %v612_v43, %v542_v51 }
  0xef   : > { %v538_v48 = vpop.f32.mrf.mxu0 }
  0xf0   : > { %v543_v56 = vadd.f32 %v538_v48, %v370_v53 }
  0xf1   : > { %v1421_v50 = vpop.f32.mrf.mxu0 }
  0xf2   : > { %v620_v61 = vadd.f32 %v615_v44, %v543_v56 }
  0xf3   : > { %v689_v52 = vpop.f32.mrf.mxu0 }
  0xf4   : > { %v696_v58 = vadd.f32 %v689_v52, %v619_v55 }
  0xf5   : > { %v1432_v54 = vpop.f32.mrf.mxu0 }
  0xf7   : > { %v692_v57 = vpop.f32.mrf.mxu0 }
  0xf8   : > { %v853_v60 = vpop.f32.mrf.mxu1  ;;  %v697_v1 = vadd.f32 %v692_v57, %v620_v61 }
  0xf9   : > { %v1433_v59 = vpop.f32.mrf.mxu0  ;;  %v860_v0 = vadd.f32 %v853_v60, %v696_v58 }
  0xfa   : > { %v1438_v62 = vpop.f32.mrf.mxu1 }
  0xfb   : > { %v930_v63 = vpop.f32.mrf.mxu0 }
  0xfc   : > { %v856_v5 = vpop.f32.mrf.mxu1  ;;  %v937_v7 = vadd.f32 %v930_v63, %v860_v0 }
  0xfd   : > { %v1444_v6 = vpop.f32.mrf.mxu0  ;;  %v861_v10 = vadd.f32 %v856_v5, %v697_v1 }
  0xfe   : > { %v1439_v8 = vpop.f32.mrf.mxu1 }
  0xff   : > { %v933_v9 = vpop.f32.mrf.mxu0 }
 0x100   : > { %v1007_v11 = vpop.f32.mrf.mxu1  ;;  %v938_v2 = vadd.f32 %v933_v9, %v861_v10 }
 0x101   : > { %v1445_v12 = vpop.f32.mrf.mxu0  ;;  %v1014_v15 = vadd.f32 %v1007_v11, %v937_v7 }
 0x102   : > { %v1450_v16 = vpop.f32.mrf.mxu1 }
 0x103   : > { %v1171_v17 = vpop.f32.mrf.mxu0 }
 0x104   : > { %v1178_v18 = vadd.f32 %v1171_v17, %v1014_v15  ;;  %v1010_v20 = vpop.f32.mrf.mxu1 }
 0x105   : > { %v1456_v22 = vpop.f32.mrf.mxu0  ;;  %v1015_v23 = vadd.f32 %v1010_v20, %v938_v2 }
 0x106   : > { %v1451_v24 = vpop.f32.mrf.mxu1  ;;  %v1187_v26 = vadd.f32 %v1373_v21, %v1178_v18 }
 0x107   : > { %v1174_v25 = vpop.f32.mrf.mxu0 }
 0x108   : > { %v1179_v27 = vadd.f32 %v1174_v25, %v1015_v23  ;;  %v1189_v30 = vmax.f32 %v1187_v26, 0.0 }
 0x109   : > { %v1457_v28 = vpop.f32.mrf.mxu0 }
 0x10a   : > { %v1188_v29 = vadd.f32 %v1373_v21, %v1179_v27 }
 0x10c   : > { %v1190_v31 = vmax.f32 %v1188_v29, 0.0 }
 0x10e   : > { %v1384_v32 = vpack.c.bf16 %v1190_v31, %v1189_v30 }
 0x110   : > { %1385 = vst [vmem:[%s221_s20] sm:$0xff] %v1384_v32  }
 0x111 PF: > { %s13_s14 = sadd.s32 1, %s1532_s14   ;;  %s1753_s12 = smov %s1528_s13 }
 0x112   : > { %p10_p5 = scmp.ge.s32.totalorder %s13_s14, 4   ;;  %s1754_s13 = smov %s1756_s15 }
 0x114   :  { %12 = sbr.rel (!%p10_p5) target bundleno = 2 (0x2), region = 81 }

// kernel: bottleneck_forward.7
= control target key start
LH: loop header
LB: loop body
LE: loop exit
PB: predicated region body
PF: predicated region fallthrough
CT: control target
= control target key end

     0   :  { %vm53_vm0 = vcmask 1041408   ;;  %vm46_vm1 = vcmask 31744   ;;  %s261_s0 = inlined_call_operand.vmem [shape: bf16[32,4], index: 0, kind: input, shape index: {}]   ;;  %s262_s1 = inlined_call_operand.vmem [shape: bf16[4,128], index: 1, kind: input, shape index: {}]   ;;  %s263_s2 = inlined_call_operand.vmem [shape: f32[1,128], index: 2, kind: input, shape index: {}]   ;;  %s264_s3 = inlined_call_operand.vmem [shape: f32[32,128], index: 3, kind: input, shape index: {}]   ;;  %s265_s4 = inlined_call_operand.hbm [shape: f32[32,128], index: 4, kind: output, shape index: {}]  }
   0x1   :  { %v35_v0 = vld [vmem:[%s262_s1] sm:$0x3]  ;;  %v183_v3 = vld [vmem:[%s261_s0 + $0x8] sm:$0xff]  }
   0x2   :  { %v182_v1 = vld [vmem:[%s261_s0] sm:$0xff]   ;;  %178 = vmatprep.subr.msk.bf16.mxu0 %vm53_vm0, %v35_v0  ;;  %v55_v2 = vsel %vm53_vm0, %v35_v0, 0 }
   0x3   :  { %173 = vmatpush3.bf16.msra.mxu0 %v55_v2  ;;  %174 = vmatprep.mubr.msk.bf16.mxu0 %vm46_vm1, %v182_v1 }
   0x4   :  { %9 = vsyncpa [#allocation4], 0  ;;  %v168_v4 = vld [vmem:[%s263_s2] ss:$0 sm:$0xff]  ;;  %v134_v6 = vld [vmem:[%s264_s3 + $0x10] sm:$0xff]  ;;  %s206_s28 = smov [#allocation3]  }
   0x5   :  { %v132_v9 = vld [vmem:[%s264_s3] sm:$0xff]  ;;  %v135_v13 = vld [vmem:[%s264_s3 + $0x18] sm:$0xff]  ;;  %v133_v18 = vld [vmem:[%s264_s3 + $0x8] sm:$0xff]  ;;  %s153_s29 = sshll.u32 %s206_s28, 4  ;;  %s154_s29 = int_to_ptr.vmem [resolvable:$true] %s153_s29 }
   0x6   :  { %175 = vmatmul.mubr.msk.bf16.vlgmr.msra.gmra.mxu0 %vm46_vm1, %v183_v3  ;;  %s184_s30 = scalar_lea.vmem %s154_s29, 512  ;;  %p189_p1 = scmp.lt.s32.totalorder %s154_s29, %s154_s29 }
   0x7   :  { %p185_p0 = scmp.ne.s32.totalorder %s154_s29, %s184_s30  ;;  %p190_p2 = scmp.lt.s32.totalorder %s184_s30, %s184_s30 }
   0x9   :  { %p191_p3 = por %p190_p2, %p189_p1 }
   0xb   :  { %p192_p4 = pnand %p191_p3, %p185_p0 }
  0xc6   :  { %v176_v5 = vpop.f32.mrf.mxu0 }
  0xc7   :  { %v130_v7 = vadd.f32 %v176_v5, %v168_v4 }
  0xc8   :  { %v91_v8 = vpop.f32.mrf.mxu0 }
  0xc9   :  { %v138_v10 = vadd.f32 %v134_v6, %v130_v7  ;;  %v128_v11 = vadd.f32 %v168_v4, %v91_v8 }
  0xca   :  { %v177_v12 = vpop.f32.mrf.mxu0 }
  0xcb   :  { %v142_v14 = vmax.f32 %v138_v10, 0.0  ;;  %v136_v15 = vadd.f32 %v132_v9, %v128_v11  ;;  %v131_v16 = vadd.f32 %v177_v12, %v168_v4 }
  0xcc   :  { %v94_v17 = vpop.f32.mrf.mxu0 }
  0xcd   :  { %146 = vst [vmem:[#allocation3 + $0x10] sm:$0xff] %v142_v14  ;;  %v140_v19 = vmax.f32 %v136_v15, 0.0  ;;  %v139_v20 = vadd.f32 %v135_v13, %v131_v16  ;;  %v129_v21 = vadd.f32 %v168_v4, %v94_v17 }
  0xcf   :  { %144 = vst [vmem:[#allocation3] sm:$0xff] %v140_v19  ;;  %v143_v22 = vmax.f32 %v139_v20, 0.0  ;;  %v137_v23 = vadd.f32 %v133_v18, %v129_v21 }
  0xd1   :  { %147 = vst [vmem:[#allocation3 + $0x18] sm:$0xff] %v143_v22  ;;  %v141_v24 = vmax.f32 %v137_v23, 0.0 }
  0xd3   :  { %145 = vst [vmem:[#allocation3 + $0x8] sm:$0xff] %v141_v24 }
  0xd4   :  { %195 = shalt.err (!%p192_p4)
}
  0xd5   :  { %s207_s3 = smov 128   ;;  %s208_s5 = smov 8  }
  0xd6   :  { %159 = dma.vmem_to_hbm [thread:$0]  %s154_s29, 512, %s265_s4, [#allocation4], %s207_s3, %s207_s3, %s208_s5  }
  0xd7   :  { %204 = dma.done.wait [#allocation4], 512  }
  0xd8   :  { %205 = vsyncadd [#allocation4], 4294966784 }
  0xd9   :  { %163 = vsyncpa [#allocation4], 1 }

</bundles_post_ra>
